<compile_context>
chip_gen: v7x
topology: tpu7x:2x2x1
jax: 0.10.0
libtpu: 0.0.40
codegen_flags: <defaults>
</compile_context>

<pallas_src>
import functools

import jax
import jax.numpy as jnp
import numpy as np
from jax.experimental import pallas as pl
from jax.experimental.pallas import tpu as pltpu


def _round_up(v, m):
    return (v + m - 1) // m * m


# ---------------------------------------------------------------------------
# Kernel: fused projection + NCHW patch scatter
# ---------------------------------------------------------------------------
def _inverse_patch_embed_kernel(x_ref, w_ref, b_ref, o_ref, *, batch_block,
                                rows_per_image, gh_block, grid_w, patch_hw,
                                in_chans):
    """x_ref: (Bt, Lb, D)   w_ref: (D, C*ph*pw)   b_ref: (1, C*ph*pw) f32
    o_ref: (Bt, C, Ght*ph, Gw*pw)"""
    Bt = batch_block
    Lb = rows_per_image            # rows allocated per image in this block
    Ght = gh_block
    Gw = grid_w
    ph, pw = patch_hw
    C = in_chans
    pp = ph * pw
    Lv = Ght * Gw                  # valid rows per image in this block

    # --- projection: one MXU matmul over every row of the block, f32 accumulate.
    if Bt == 1:
        x2 = x_ref[0]                                          # (Lb, D)
    else:
        # Lb is sublane-aligned (wrapper pads L), so this flatten is layout-free.
        x2 = x_ref[...].reshape(Bt * Lb, x_ref.shape[-1])
    acc = jnp.dot(x2, w_ref[...], preferred_element_type=jnp.float32)

    # Bias add, then cast to the OUTPUT dtype before the scatter: the relayout
    # below is pure ld/st + XLU work, so doing it in bf16 halves the bytes
    # moved through VMEM and the vreg pressure.
    y = (acc + b_ref[...]).astype(o_ref.dtype)                 # (Bt*Lb, C*pp)

    # --- NCHW scatter, per image / per channel (statically unrolled, C small).
    # (gh, gw | i, j) -> (gh*ph + i, gw*pw + j): one small 4-D relayout per
    # channel instead of a generic 5-D transpose; stores are full-width slabs.
    for b in range(Bt):
        yb = y[b * Lb:b * Lb + Lv]                             # (Lv, C*pp)
        for c in range(C):
            yc = yb[:, c * pp:(c + 1) * pp]                    # (Lv, ph*pw)
            yc = yc.reshape(Ght, Gw, ph, pw)
            yc = jnp.transpose(yc, (0, 2, 1, 3))               # (Ght, ph, Gw, pw)
            o_ref[b, c] = yc.reshape(Ght * ph, Gw * pw)


# ---------------------------------------------------------------------------
# Tile selection
# ---------------------------------------------------------------------------
def _pick_tiles(B, L, Gh, Gw, D, C, ph, pw, x_itemsize, out_itemsize,
                vmem_budget=16 * 1024 * 1024):
    """Choose (batch block Bt, patch-row block Ght).

    Priorities: 1) fit the default scoped VMEM of every TPU generation
    (v5e 16 MiB, v6e/v7x 32 MiB) including double buffering; 2) expose >= 2
    'parallel' grid steps (v7x has two TensorCores); 3) feed the MXU >= 256
    rows per step (v6e/v7x 256-row MXU) by blocking batches, without dropping
    below 2 grid steps.
    """
    N = C * ph * pw
    W = Gw * pw
    in_align = 8 * max(1, 4 // x_itemsize)
    out_align = 8 * max(1, 4 // out_itemsize)

    def aligned(ght):
        # Full-image blocks are exempt from the (8,128)-multiple rule; partial
        # blocks must keep their second-to-last dims sublane aligned.
        return ght == Gh or ((ght * Gw) % in_align == 0 and
                             (ght * ph) % out_align == 0)

    def vmem_bytes(bt, ght):
        lblk = _round_up(L, in_align) if bt > 1 else ght * Gw
        x_blk = bt * lblk * D * x_itemsize
        o_blk = bt * C * ght * ph * W * out_itemsize
        consts = D * N * x_itemsize + N * 4
        acc = bt * lblk * N * 4
        # x/out double-buffered by the pipeline, weight/bias also get 2 buffers,
        # ~2x the f32 accumulator covers the cast + scatter temporaries.
        return 2 * (x_blk + o_blk + consts) + 2 * acc

    # Batch block: smallest divisor of B reaching 256 matmul rows, bounded by
    # VMEM and by keeping >= 2 grid steps whenever B >= 2 (v7x megacore).
    Bt = 1
    for cand in range(1, B + 1):
        if B % cand:
            continue
        if B >= 2 and B // cand < 2:
            break
        if vmem_bytes(cand, Gh) > vmem_budget:
            break
        Bt = cand
        if cand * L >= 256:
            break

    Ght = Gh
    # VMEM guard (matters when the module is reused at large image sizes,
    # especially under v7x's 64 MiB physical / 32 MiB default-scoped VMEM).
    if vmem_bytes(Bt, Ght) > vmem_budget:
        for cand in sorted((d for d in range(1, Gh) if Gh % d == 0), reverse=True):
            if aligned(cand) and vmem_bytes(1, cand) <= vmem_budget:
                Bt, Ght = 1, cand
                break
        # TODO(synk): if Gh has no aligned divisor that fits, keep the
        # full-image block and rely on vmem_limit_bytes headroom instead of
        # emitting tiles that break the (8,128)/(16,128) block constraint.

    # Megacore: expose >= 2 parallel grid steps when the batch alone cannot.
    if (B // Bt) * (Gh // Ght) < 2:
        for cand in sorted((d for d in range(1, Gh) if Gh % d == 0), reverse=True):
            if aligned(cand):
                Bt, Ght = 1, cand
                break
    return Bt, Ght


# ---------------------------------------------------------------------------
# Wrapper
# ---------------------------------------------------------------------------
def inverse_patch_embed(x, proj_weight, proj_bias, *, grid_size, patch_size,
                        in_chans, out_dtype=None, batch_block=None,
                        gh_block=None):
    """x: (B, L, D); proj_weight: (D, C, ph, pw) [PyTorch ConvTranspose2d
    layout] or pre-flattened (D, C*ph*pw); proj_bias: (C,) or pre-expanded
    (1, C*ph*pw). Returns (B, C, Gh*ph, Gw*pw) NCHW."""
    B, L, D = x.shape
    Gh, Gw = grid_size
    ph, pw = patch_size
    C = in_chans
    assert L == Gh * Gw
    H, W = Gh * ph, Gw * pw
    N = C * ph * pw
    out_dtype = x.dtype if out_dtype is None else np.dtype(out_dtype)

    # Flattened projection operands, column order (c, i, j). Normally built once
    # in make_inverse_patch_embed; under jit they constant-fold either way.
    if proj_weight.ndim == 4:
        proj_weight = proj_weight.reshape(D, N)
    w2 = proj_weight.astype(x.dtype)          # bf16 stays bf16 -> half the DMA bytes
    if proj_bias.ndim == 1 and proj_bias.shape[0] == C:
        proj_bias = jnp.repeat(proj_bias, ph * pw)
    b2 = proj_bias.reshape(1, N).astype(jnp.float32)   # added on the f32 accumulator
    assert w2.shape == (D, N)

    Bt, Ght = _pick_tiles(B, L, Gh, Gw, D, C, ph, pw,
                          x.dtype.itemsize, np.dtype(out_dtype).itemsize)
    if batch_block is not None:
        Bt = batch_block
    if gh_block is not None:
        Ght = gh_block
    assert B % Bt == 0 and Gh % Ght == 0 and (Bt == 1 or Ght == Gh)

    # Pad the patch axis only when blocking several images into one matmul, so
    # the in-kernel (Bt, Lb, D) -> (Bt*Lb, D) flatten is a pure relabel (no
    # sublane relayout); padded rows are never read by the scatter.
    in_align = 8 * max(1, 4 // x.dtype.itemsize)
    Lp = _round_up(L, in_align) if Bt > 1 else L
    if Lp != L:
        x = jnp.pad(x, ((0, 0), (0, Lp - L), (0, 0)))
    lblk = Lp if Ght == Gh else Ght * Gw

    kernel = functools.partial(
        _inverse_patch_embed_kernel, batch_block=Bt, rows_per_image=lblk,
        gh_block=Ght, grid_w=Gw, patch_hw=(ph, pw), in_chans=C)

    return pl.pallas_call(
        kernel,
        out_shape=jax.ShapeDtypeStruct((B, C, H, W), out_dtype),
        grid=(B // Bt, Gh // Ght),
        in_specs=[
            pl.BlockSpec((Bt, lblk, D), lambda b, g: (b, g, 0)),
            # Grid-invariant operands: constant index_map -> fetched once.
            # (pipeline_mode=pl.Buffered(1) would save one resident copy;
            #  kept double-buffered to keep the lowering conservative.)
            pl.BlockSpec((D, N), lambda b, g: (0, 0)),
            pl.BlockSpec((1, N), lambda b, g: (0, 0)),
        ],
        out_specs=pl.BlockSpec((Bt, C, Ght * ph, W), lambda b, g: (b, 0, g, 0)),
        compiler_params=pltpu.CompilerParams(
            dimension_semantics=("parallel", "parallel")),
    )(x, w2, b2)


# ---------------------------------------------------------------------------
# Module-equivalent factory with deterministic parameter init.
# ---------------------------------------------------------------------------
def make_inverse_patch_embed(key, *, img_size=16, patch_size=4, patch_stride=4,
                             in_chans=3, embed_dim=32, out_dtype=None):
    # TODO(synk): only kernel_size == stride (padding=0) is implemented; the
    # general overlapping ConvTranspose2d case is not needed for the module's
    # default configuration.
    assert patch_size == patch_stride, "non-overlapping patches only"
    grid = (img_size // patch_stride, img_size // patch_stride)
    kw_key, kb_key = jax.random.split(key)
    # PyTorch ConvTranspose2d weight layout: (in=embed_dim, out=in_chans, kh, kw)
    fan = in_chans * patch_size * patch_size
    bound = 1.0 / np.sqrt(fan)
    weight = jax.random.uniform(kw_key, (embed_dim, in_chans, patch_size, patch_size),
                                jnp.float32, -bound, bound)
    bias = jax.random.uniform(kb_key, (in_chans,), jnp.float32, -bound, bound)

    # Hoisted, call-invariant operands: flattened projection matrix (columns in
    # (c, i, j) order) and the per-column f32 bias row. As jit closure constants
    # they cost nothing per call.
    n_cols = in_chans * patch_size * patch_size
    w2 = weight.reshape(embed_dim, n_cols)
    b2 = jnp.repeat(bias, patch_size * patch_size).reshape(1, n_cols)

    @jax.jit
    def forward(x):
        return inverse_patch_embed(
            x, w2, b2, grid_size=grid, patch_size=(patch_size, patch_size),
            in_chans=in_chans, out_dtype=out_dtype)

    return forward, weight, bias, grid


def _reference(x, weight, bias, grid, patch, in_chans):
    """Independent reference: ConvTranspose2d via conv_general_dilated identity."""
    B, L, D = x.shape
    Gh, Gw = grid
    ph, pw = patch
    x_img = jnp.transpose(x, (0, 2, 1)).reshape(B, D, Gh, Gw)          # NCHW
    rhs = jnp.flip(weight, axis=(2, 3)).transpose(1, 0, 2, 3)          # (C, D, ph, pw) OIHW
    y = jax.lax.conv_general_dilated(
        x_img, rhs,
        window_strides=(1, 1),
        padding=[(ph - 1, ph - 1), (pw - 1, pw - 1)],
        lhs_dilation=(ph, pw),
        dimension_numbers=("NCHW", "OIHW", "NCHW"))
    return y + bias.reshape(1, in_chans, 1, 1)


if __name__ == "__main__":
    key = jax.random.PRNGKey(0)
    pkey, xkey = jax.random.split(key)

    # Small demo config (module defaults scaled down). NOTE: at this size the
    # output lane widths (W=16, N=48) are < 128, so stores are masked and the
    # kernel is fixed-overhead dominated — correctness check only, do not use
    # this shape for benchmarking.
    B, img_size, patch, in_chans, embed_dim = 2, 16, 4, 3, 32
    forward, weight, bias, grid = make_inverse_patch_embed(
        pkey, img_size=img_size, patch_size=patch, patch_stride=patch,
        in_chans=in_chans, embed_dim=embed_dim)

    Gh, Gw = grid
    L = Gh * Gw
    x = jax.random.normal(xkey, (B, L, embed_dim), jnp.float32)

    # float32 path: must match the ConvTranspose2d reference tightly.
    y = jax.block_until_ready(forward(x))
    y_ref = _reference(x, weight, bias, grid, (patch, patch), in_chans)
    np.testing.assert_allclose(np.asarray(y), np.asarray(y_ref), rtol=1e-5, atol=1e-5)
    assert y.shape == (B, in_chans, img_size, img_size)

    # bfloat16 path: bf16 operands into the MXU (half the input DMA), f32
    # accumulation, bf16 scatter + stores.
    x_bf = x.astype(jnp.bfloat16)
    y_bf = jax.block_until_ready(forward(x_bf))
    assert y_bf.shape == (B, in_chans, img_size, img_size)
    assert y_bf.dtype == jnp.bfloat16
    y_bf_ref = _reference(x_bf.astype(jnp.float32),
                          weight.astype(jnp.bfloat16).astype(jnp.float32),
                          bias, grid, (patch, patch), in_chans)
    np.testing.assert_allclose(np.asarray(y_bf.astype(jnp.float32)),
                               np.asarray(y_bf_ref), rtol=2e-2, atol=2e-2)

    print("KERNEL_OK")
</pallas_src>

<mosaic_0001>
module attributes {stable_mosaic.version = 11 : i64} {
  func.func @_inverse_patch_embed_kernel(%arg0: i32, %arg1: i32, %arg2: memref<1x16x32xf32, #tpu.memory_space<vmem>>, %arg3: memref<32x48xf32, #tpu.memory_space<vmem>>, %arg4: memref<1x48xf32, #tpu.memory_space<vmem>>, %arg5: memref<1x3x16x16xf32, #tpu.memory_space<vmem>>) attributes {dimension_semantics = [#tpu.dimension_semantics<parallel>, #tpu.dimension_semantics<parallel>], iteration_bounds = array<i64: 2, 1>, scalar_prefetch = 0 : i64, scratch_operands = 0 : i64, tpu.core_type = #tpu.core_type<tc>, window_params = [{transform_indices = @transform_0, window_bounds = array<i64: 1, 16, 32>}, {pipeline_mode = #tpu.pipeline_mode<synchronous>, transform_indices = @transform_1, window_bounds = array<i64: 32, 48>}, {pipeline_mode = #tpu.pipeline_mode<synchronous>, transform_indices = @transform_2, window_bounds = array<i64: 1, 48>}, {transform_indices = @transform_3, window_bounds = array<i64: 1, 3, 16, 16>}]} {
    %c0 = arith.constant 0 : index
    %c0_0 = arith.constant 0 : index
    %c0_1 = arith.constant 0 : index
    %0 = vector.load %arg2[%c0, %c0_0, %c0_1] : memref<1x16x32xf32, #tpu.memory_space<vmem>>, vector<1x16x32xf32>
    %1 = vector.shape_cast %0 : vector<1x16x32xf32> to vector<16x32xf32>
    %c0_2 = arith.constant 0 : index
    %c0_3 = arith.constant 0 : index
    %2 = vector.load %arg3[%c0_2, %c0_3] : memref<32x48xf32, #tpu.memory_space<vmem>>, vector<32x48xf32>
    %cst = arith.constant dense<0.000000e+00> : vector<16x48xf32>
    %3 = tpu.matmul %1, %2, %cst {dimension_numbers = #tpu.dot_dimension_numbers<[1], [0], [0], [1], [0, 0, 1, 1], [], []>} : vector<16x32xf32>, vector<32x48xf32>, vector<16x48xf32> -> vector<16x48xf32>
    %c0_4 = arith.constant 0 : index
    %c0_5 = arith.constant 0 : index
    %4 = vector.load %arg4[%c0_4, %c0_5] : memref<1x48xf32, #tpu.memory_space<vmem>>, vector<1x48xf32>
    %5 = vector.broadcast %4 : vector<1x48xf32> to vector<16x48xf32>
    %6 = arith.addf %3, %5 : vector<16x48xf32>
    %7 = vector.extract_strided_slice %6 {offsets = [0, 0], sizes = [16, 16], strides = [1, 1]} : vector<16x48xf32> to vector<16x16xf32>
    %8 = vector.shape_cast %7 : vector<16x16xf32> to vector<4x4x4x4xf32>
    %9 = tpu.transpose %8, [0, 2, 1, 3] : vector<4x4x4x4xf32> -> vector<4x4x4x4xf32>
    %10 = vector.shape_cast %9 : vector<4x4x4x4xf32> to vector<16x16xf32>
    %c0_6 = arith.constant 0 : index
    %c0_7 = arith.constant 0 : index
    %c0_8 = arith.constant 0 : index
    %c0_9 = arith.constant 0 : index
    %11 = vector.load %arg5[%c0_6, %c0_7, %c0_8, %c0_9] : memref<1x3x16x16xf32, #tpu.memory_space<vmem>>, vector<1x1x16x16xf32>
    %12 = vector.shape_cast %11 : vector<1x1x16x16xf32> to vector<16x16xf32>
    %13 = vector.shape_cast %10 : vector<16x16xf32> to vector<1x1x16x16xf32>
    tpu.vector_store %arg5[%c0_6, %c0_7, %c0_8, %c0_9], %13 {strides = array<i32>} : memref<1x3x16x16xf32, #tpu.memory_space<vmem>>, vector<1x1x16x16xf32>,
    %14 = vector.extract_strided_slice %6 {offsets = [0, 16], sizes = [16, 16], strides = [1, 1]} : vector<16x48xf32> to vector<16x16xf32>
    %15 = vector.shape_cast %14 : vector<16x16xf32> to vector<4x4x4x4xf32>
    %16 = tpu.transpose %15, [0, 2, 1, 3] : vector<4x4x4x4xf32> -> vector<4x4x4x4xf32>
    %17 = vector.shape_cast %16 : vector<4x4x4x4xf32> to vector<16x16xf32>
    %c0_10 = arith.constant 0 : index
    %c1 = arith.constant 1 : index
    %c0_11 = arith.constant 0 : index
    %c0_12 = arith.constant 0 : index
    %18 = vector.load %arg5[%c0_10, %c1, %c0_11, %c0_12] : memref<1x3x16x16xf32, #tpu.memory_space<vmem>>, vector<1x1x16x16xf32>
    %19 = vector.shape_cast %18 : vector<1x1x16x16xf32> to vector<16x16xf32>
    %20 = vector.shape_cast %17 : vector<16x16xf32> to vector<1x1x16x16xf32>
    tpu.vector_store %arg5[%c0_10, %c1, %c0_11, %c0_12], %20 {strides = array<i32>} : memref<1x3x16x16xf32, #tpu.memory_space<vmem>>, vector<1x1x16x16xf32>,
    %21 = vector.extract_strided_slice %6 {offsets = [0, 32], sizes = [16, 16], strides = [1, 1]} : vector<16x48xf32> to vector<16x16xf32>
    %22 = vector.shape_cast %21 : vector<16x16xf32> to vector<4x4x4x4xf32>
    %23 = tpu.transpose %22, [0, 2, 1, 3] : vector<4x4x4x4xf32> -> vector<4x4x4x4xf32>
    %24 = vector.shape_cast %23 : vector<4x4x4x4xf32> to vector<16x16xf32>
    %c0_13 = arith.constant 0 : index
    %c2 = arith.constant 2 : index
    %c0_14 = arith.constant 0 : index
    %c0_15 = arith.constant 0 : index
    %25 = vector.load %arg5[%c0_13, %c2, %c0_14, %c0_15] : memref<1x3x16x16xf32, #tpu.memory_space<vmem>>, vector<1x1x16x16xf32>
    %26 = vector.shape_cast %25 : vector<1x1x16x16xf32> to vector<16x16xf32>
    %27 = vector.shape_cast %24 : vector<16x16xf32> to vector<1x1x16x16xf32>
    tpu.vector_store %arg5[%c0_13, %c2, %c0_14, %c0_15], %27 {strides = array<i32>} : memref<1x3x16x16xf32, #tpu.memory_space<vmem>>, vector<1x1x16x16xf32>,
    return
  }
  func.func @transform_0(%arg0: i32, %arg1: i32) -> (i32, i32, i32) {
    %c0_i32 = arith.constant 0 : i32
    %c0_i32_0 = arith.constant 0 : i32
    return %arg0, %arg1, %c0_i32 : i32, i32, i32
  }
  func.func @transform_1(%arg0: i32, %arg1: i32) -> (i32, i32) {
    %c0_i32 = arith.constant 0 : i32
    %c0_i32_0 = arith.constant 0 : i32
    %c0_i32_1 = arith.constant 0 : i32
    return %c0_i32, %c0_i32_0 : i32, i32
  }
  func.func @transform_2(%arg0: i32, %arg1: i32) -> (i32, i32) {
    %c0_i32 = arith.constant 0 : i32
    %c0_i32_0 = arith.constant 0 : i32
    %c0_i32_1 = arith.constant 0 : i32
    return %c0_i32, %c0_i32_0 : i32, i32
  }
  func.func @transform_3(%arg0: i32, %arg1: i32) -> (i32, i32, i32, i32) {
    %c0_i32 = arith.constant 0 : i32
    %c0_i32_0 = arith.constant 0 : i32
    %c0_i32_1 = arith.constant 0 : i32
    return %arg0, %c0_i32, %arg1, %c0_i32_0 : i32, i32, i32, i32
  }
}

</mosaic_0001>

<bundles_post_ra>
// kernel: forward.1
= control target key start
LH: loop header
LB: loop body
LE: loop exit
PB: predicated region body
PF: predicated region fallthrough
CT: control target
= control target key end

     0   :  { %8 = vsyncpa [#allocation3], 0  ;;  %s2764_s0 = inlined_call_operand.hbm [shape: f32[2,16,32], index: 0, kind: input, shape index: {}]   ;;  %s2765_s1 = inlined_call_operand.hbm [shape: f32[32,48], index: 1, kind: input, shape index: {}]   ;;  %s2766_s2 = inlined_call_operand.vmem [shape: f32[1,48], index: 2, kind: input, shape index: {}]   ;;  %s2767_s3 = inlined_call_operand.hbm [shape: f32[2,3,16,16], index: 3, kind: output, shape index: {}]  }
   0x1   :  { %10 = vsyncpa [#allocation3 + $0x1], 0 }
   0x2   :  { %11 = vsyncpa [#allocation6], 0 }
   0x3   :  { %12 = vsyncpa [#allocation4], 0 }
   0x4   :  { %14 = vsyncpa [#allocation4 + $0x1], 0  ;;  %s2167_s12 = smov 0   ;;  %s2169_s13 = smov 0  }
   0x5   :  { %s2171_s14 = smov 0   ;;  %s2173_s15 = smov 0  }
   0x6   :  { %s2175_s16 = smov 0   ;;  %s2177_s17 = smov 0  }
   0x7 LB: > { %s1826_s18 = sadd.s32 4294967295, %s2129_s17   ;;  %s1827_s19 = sadd.s32 4294967294, %s2129_s17   ;;  %s2129_s17 = sphi %s2177_s17, %s20_s17   ;;  %s2125_s16 = sphi %s2175_s16, %s2791_s16   ;;  %s2121_s15 = sphi %s2173_s15, %s2790_s15   ;;  %s2117_s14 = sphi %s2171_s14, %s2789_s14   ;;  %s2113_s13 = sphi %s2169_s13, %s2788_s13   ;;  %s2109_s12 = sphi %s2167_s12, %s2787_s12  }
   0x8   : > { %p54_p0 = scmp.ne.s32.totalorder %s2113_s13, %s2109_s12  ;;  %p2201_p1 = scmp.eq.s32.totalorder %s1826_s18, 0 }
   0x9   : > { %p2205_p2 = scmp.eq.s32.totalorder %s1826_s18, 1  ;;  %p128_p3 = scmp.eq.s32.totalorder %s1827_s19, 1 }
   0xa   : > { %s2772_s20 = scalar_select %p2201_p1, 1, 0 }
   0xb   : > { %s2773_s21 = scalar_select %p2205_p2, 1, 0 }
   0xc   : > { %p2211_p4 = por %p2201_p1, %p54_p0  ;;  %p1828_p5 = scmp.ge.s32.totalorder %s2129_s17, 1 }
   0xd   : > { %p2216_p6 = por %p128_p3, %p54_p0  ;;  %p135_p7 = scmp.lt.s32.totalorder %s2129_s17, 3 }
   0xe   : > { %s2774_s22 = scalar_select %p2211_p4, 1, 0 }
   0xf   : > { %s2775_s23 = scalar_select %p2216_p6, 1, 0 }
  0x10   : > { %p2221_p8 = pnand %p1828_p5, %p135_p7  ;;  %s2131_s25 = smov [#allocation5]  }
  0x11   : > { %s147_s26 = sshll.u32 %s2131_s25, 4  ;;  %s32_s28 = sadd.s32 1, %s2125_s16  ;;  %s148_s26 = int_to_ptr.vmem [resolvable:$true] %s147_s26 }
  0x12   : > { %s2776_s24 = scalar_select %p2221_p8, 1, 0 }
  0x13   : > { %p1907_p9 = pneg %p2221_p8  ;;  %s1985_s4 = scalar_lea.hbm %s2765_s1, 512 }
  0x14   : > { %p1986_p12 = scmp.ne.s32.totalorder %s2765_s1, %s1985_s4  ;;  %p1992_p5 = scmp.lt.u32.totalorder %s1985_s4, %s2765_s1 }
  0x15   : > { %p2230_p11 = pnand %p1907_p9, %p2201_p1 }
  0x17   : > { %p1987_p13 = pneg %p2230_p11 }
  0x19   : > { %p1988_p0 = pnand %p1987_p13, %p1986_p12 }
  0x1b   : > { %p1989_p3 = pneg %p1988_p0 }
  0x1d   : > { %p1994_p7 = pnand %p1992_p5, %p1989_p3 }
  0x1f   : > { %1997 = shalt.err (!%p1994_p7)
}
  0x20   : > { %s1998_s9 = scalar_lea.vmem %s148_s26, 512  ;;  %p2006_p1 = scmp.lt.s32.totalorder %s148_s26, %s148_s26 }
  0x21   : > { %p1999_p9 = scmp.ne.s32.totalorder %s148_s26, %s1998_s9  ;;  %p2007_p4 = scmp.lt.s32.totalorder %s1998_s9, %s1998_s9 }
  0x23   : > { %p2001_p10 = pnand %p1999_p9, %p1987_p13  ;;  %p2008_p8 = por %p2007_p4, %p2006_p1 }
  0x25   : > { %p2002_p6 = pneg %p2001_p10 }
  0x27   : > { %p2009_p2 = pnand %p2008_p8, %p2002_p6 }
  0x29   : > { %2012 = shalt.err (!%p2009_p2)
}
  0x2a   : > { %s2132_s10 = smov 128   ;;  %s2133_s11 = smov 8  }
  0x2b   : > { %1910 = dma.hbm_to_vmem [thread:$0]  (!%p2230_p11), %s2765_s1, 512, %s148_s26, [#allocation6], %s2132_s10, %s2132_s10, %s2133_s11  }
  0x2c   : > { %p34_p1 = scmp.ge.s32.totalorder %s32_s28, 2  ;;  %s41_s25 = sadd.s32 1, %s2117_s14 }
  0x2d   : > { %p48_p2 = scmp.ne.s32.totalorder %s2117_s14, %s2113_s13  ;;  %p49_p4 = scmp.eq.s32.totalorder %s2129_s17, 0 }
  0x2e   : > { %s2793_s28 = smov (%p34_p1, %s32_s28), 0  ;;  %p2779_p8 = scmp.ne.s32.totalorder %s2773_s21, 0 }
  0x2f   : > { %p2260_p6 = por %p49_p4, %p48_p2  ;;  %s36_s30 = ssub.s32 %s2125_s16, %s2793_s28 }
  0x30   : > { %p2266_p10 = por %p2779_p8, %p48_p2  ;;  %p1920_p12 = scmp.lt.s32.totalorder %s2129_s17, 2 }
  0x31   : > { %p39_p11 = scmp.eq.s32.totalorder %s36_s30, 0  ;;  %s164_s26 = sand.u32 1, %s2117_s14  }
  0x32   : > { %s1831_s4 = sshll.u32 %s164_s26, 4  ;;  %s1871_s6 = sshll.u32 %s2125_s16, 8 }
  0x33   : > { %s2275_s5 = scalar_select %p39_p11, %s2117_s14, %s41_s25  }
  0x34   : > { %s2281_s9 = scalar_lea.hbm %s2764_s0, %s1871_s6  ;;  %s168_s21 = scalar_lea.vmem [#allocation2], %s1831_s4 }
  0x35   : > { %s177_s18 = sshll.u32 %s168_s21, 4  ;;  %p2287_p13 = pnand %p1920_p12, %p2260_p6  ;;  %s2283_s18 = int_to_ptr.vmem [resolvable:$true] %s177_s18 }
  0x36   : > { %s2291_s25 = scalar_lea.sflag [#allocation3], %s164_s26  ;;  %s2013_s30 = scalar_lea.hbm %s2281_s9, 256 }
  0x37   : > { %p2014_p0 = scmp.ne.s32.totalorder %s2281_s9, %s2013_s30  ;;  %p2015_p3 = pneg %p2287_p13 }
  0x38   : > { %s2018_s29 = scalar_lea.hbm %s2764_s0, 512  ;;  %p2019_p9 = scmp.lt.u32.totalorder %s2281_s9, %s2764_s0 }
  0x39   : > { %p2016_p5 = pnand %p2015_p3, %p2014_p0  ;;  %p2020_p1 = scmp.lt.u32.totalorder %s2018_s29, %s2013_s30 }
  0x3a   : > { %p2022_p4 = scmp.lt.u32.totalorder %s2013_s30, %s2281_s9 }
  0x3b   : > { %p2017_p7 = pneg %p2016_p5  ;;  %p2021_p2 = por %p2020_p1, %p2019_p9 }
  0x3d   : > { %p2023_p6 = por %p2022_p4, %p2021_p2 }
  0x3f   : > { %p2024_p8 = pnand %p2023_p6, %p2017_p7 }
  0x41   : > { %2027 = shalt.err (!%p2024_p8)
}
  0x42   : > { %s2028_s26 = scalar_lea.vmem %s2283_s18, 256  ;;  %s2134_s21 = smov [#allocation2]  }
  0x43   : > { %p2029_p12 = scmp.ne.s32.totalorder %s2283_s18, %s2028_s26  ;;  %s2033_s4 = sshll.u32 %s2134_s21, 4  ;;  %s2034_s4 = int_to_ptr.vmem [resolvable:$false] %s2033_s4 }
  0x44   : > { %s2035_s6 = scalar_lea.vmem %s2034_s4, 512  ;;  %p2036_p5 = scmp.lt.s32.totalorder %s2283_s18, %s2034_s4 }
  0x45   : > { %p2031_p11 = pnand %p2029_p12, %p2015_p3  ;;  %p2037_p9 = scmp.lt.s32.totalorder %s2035_s6, %s2028_s26 }
  0x47   : > { %p2032_p0 = pneg %p2031_p11  ;;  %p2038_p1 = por %p2037_p9, %p2036_p5 }
  0x49   : > { %p2039_p2 = pnand %p2038_p1, %p2032_p0 }
  0x4b   : > { %2042 = shalt.err (!%p2039_p2)
}
  0x4c   : > { %1914 = dma.hbm_to_vmem [thread:$0]  (!%p2287_p13), %s2281_s9, 256, %s2283_s18, %s2291_s25, %s2132_s10, %s2132_s10, %s2133_s11  }
  0x4d   : > { %p2782_p3 = scmp.ne.s32.totalorder %s2776_s24, 0 }
  0x4e   : > { %s2325_s30 = sand.u32 (!%p2782_p3), 1, %s2113_s13   ;;  %p2783_p7 = scmp.ne.s32.totalorder (!%p2782_p3), %s2774_s22, 0 }
  0x4f   : > { %189 = sbr.rel (%p2782_p3) target bundleno = 756 (0x2f4), region = 32  ;;  %s1835_s29 = sshll.u32 (!%p2782_p3), %s2325_s30, 4 }
  0x50   : > { %s192_s7 = scalar_lea.sflag (!%p2782_p3), [#allocation3], %s2325_s30  ;;  %s195_s8 = scalar_lea.vmem (!%p2782_p3), [#allocation2], %s1835_s29 }
  0x56   : > { %2096 = dma.done.wait (%p2783_p7), %s192_s7, 256  }
  0x57   : > { %2098 = vsyncadd (%p2783_p7), %s192_s7, 4294967040  ;;  %p2784_p4 = scmp.ne.s32.totalorder %s2772_s20, 0 }
  0x59   : > { %2100 = dma.done.wait (%p2784_p4), [#allocation6], 512  }
  0x5a   : > { %2102 = vsyncadd (%p2784_p4), [#allocation6], 4294966784  ;;  %vm237_vm0 = vcmask 261120   ;;  %v226_v0 = vld [vmem:[#allocation5] sm:$0xff]  ;;  %v227_v1 = vld [vmem:[#allocation5 + $0x8] sm:$0xff]  ;;  %s2135_s20 = smov 120   ;;  %v344_v15 = vlaneseq }
  0x5b   : > { %v228_v2 = vld [vmem:[#allocation5 + $0x10] sm:$0xff]  ;;  %v1889_v3 = vpack.c.bf16 %v227_v1, %v226_v0  ;;  %v229_v4 = vld [vmem:[#allocation5 + $0x18] sm:$0xff]  ;;  %v1837_v8 = vld [vmem:[%s2766_s2] ss:$0 sm:$0xff]  ;;  %s2136_s10 = smov 124   ;;  %s2137_s11 = smov 116  }
  0x5c   : > { %v224_v5 = vld [vmem:[%s195_s8] sm:$0xff]  ;;  %v1893_v6 = vpack.c.bf16 %v229_v4, %v228_v2  ;;  %v225_v7 = vld [vmem:[%s195_s8 + $0x8] sm:$0xff]  ;;  %s2138_s9 = smov 112   ;;  %s2139_s18 = smov 96   ;;  %v2140_v13 = vmov 1983009808  }
  0x5d   : > { %1886 = vmatprep.mubr.msk.f32.mxu0 %vm237_vm0, %v224_v5  ;;  %1890 = vmatprep.subr.bf16.mxu0 %v1889_v3  ;;  %v342_v14 = vunpack.c.l.s4 %v2140_v13  ;;  %v345_v19 = vshrl.u32 %v344_v15, 7  ;;  %v2141_v20 = vmov 1934713408   ;;  %s2142_s19 = smov 4   ;;  %s2143_s25 = smov 8   ;;  %vm771_vm1 = vcmask 31744  }
  0x5e   : > { %1892 = vmatpush3.bf16.msra.mxu0 %v1889_v3  ;;  %v374_v21 = vunpack.c.l.s4 %v2141_v20  ;;  %s2144_s26 = smov 12   ;;  %vm774_vm2 = vcmask 64512   ;;  %vm777_vm3 = vcmask 97280   ;;  %vm780_vm4 = vcmask 130048   ;;  %s1897_s21 = smul.u32 48, %s2325_s30 }
  0x5f   : > { %1894 = vmatprep.subr.bf16.mxu0 %v1893_v6  ;;  %v343_v18 = vunpack.c.0.s8 %v342_v14  ;;  %s1898_s29 = smul.u32 768, %s2121_s15  ;;  %s1714_s22 = scalar_lea.sflag [#allocation4], %s2325_s30 }
  0x60   : > { %v375_v27 = vunpack.c.0.s8 %v374_v21  ;;  %s2608_s4 = scalar_lea.vmem [#allocation7], %s1897_s21 }
  0x61   : > { %v2349_v24 = vsub.s32 %v343_v18, %v345_v19  ;;  %s1729_s6 = sshll.u32 %s2608_s4, 4  ;;  %s2711_s15 = scalar_lea.hbm %s2767_s3, %s1898_s29  ;;  %s2704_s6 = int_to_ptr.vmem [resolvable:$true] %s1729_s6 }
  0x62   : > { %1896 = vmatpush3.bf16.msra.mxu0 %v1893_v6  ;;  %v2360_v38 = vsub.s32 %v375_v27, %v345_v19  ;;  %s2043_s24 = scalar_lea.vmem %s2704_s6, 768 }
  0x63   : > { %p2044_p13 = scmp.ne.s32.totalorder %s2704_s6, %s2043_s24 }
  0x65   : > { %1887 = vmatmul.mubr.msk.f32.vlgmr.msra.gmra.mrb[0].mxu0 %vm237_vm0, %v225_v7  ;;  %p2045_p6 = pnand %p2044_p13, %p2266_p10 }
  0x67   : > { %p2046_p8 = pneg %p2045_p6 }
 0x138   : > { %v1888_v9 = vpop.f32.mrb[0].mxu0 }
 0x139   : > { %v316_v10 = vadd.f32 %v1888_v9, %v1837_v8  ;;  %v310_v11 = vpop.f32.mrb[1].mxu0 }
 0x13a   : > { %v311_v12 = vadd.f32 %v1837_v8, %v310_v11 }
 0x13b   : > { %329 = vrot.lane.b32.xlu1 %v316_v10, %s2135_s20  ;;  %323 = vrot.lane.b32.xlu0 %v316_v10, %s2136_s10 }
 0x13f   : > { %327 = vrot.lane.b32.xlu1 %v311_v12, %s2135_s20  ;;  %321 = vrot.lane.b32.xlu0 %v311_v12, %s2136_s10  ;;  %s2145_s20 = smov [#allocation7]  }
 0x140   : > { %s2047_s10 = sshll.u32 %s2145_s20, 4  ;;  %s2048_s10 = int_to_ptr.vmem [resolvable:$false] %s2047_s10 }
 0x141   : > { %p2050_p12 = scmp.lt.s32.totalorder %s2704_s6, %s2048_s10 }
 0x143   : > { %335 = vrot.lane.b32.xlu1 %v316_v10, %s2137_s11  ;;  %333 = vrot.lane.b32.xlu0 %v311_v12, %s2137_s11  ;;  %s2049_s11 = scalar_lea.vmem %s2048_s10, 1536 }
 0x144   : > { %p2051_p11 = scmp.lt.s32.totalorder %s2049_s11, %s2043_s24 }
 0x146   : > { %p2052_p0 = por %p2051_p11, %p2050_p12 }
 0x147   : > { %785 = vrot.lane.b32.xlu1 %v316_v10, %s2138_s9  ;;  %783 = vrot.lane.b32.xlu0 %v311_v12, %s2138_s9 }
 0x148   : > { %p2053_p5 = pnand %p2052_p0, %p2046_p8 }
 0x14b   : > { %1250 = vrot.lane.b32.xlu1 %v316_v10, %s2139_s18  ;;  %1248 = vrot.lane.b32.xlu0 %v311_v12, %s2139_s18 }
 0x1ad   : > { %v330_v16 = vpop.permute.xlu1 %329  ;;  %v324_v17 = vpop.permute.xlu0 %323 }
 0x1ae   : > { %789 = vrot.lane.b32.xlu1 %v324_v17, %s2138_s9  ;;  %v407_v25 = vcombine.low %v316_v10, %v330_v16  ;;  %v408_v26 = vcombine.high %v316_v10, %v330_v16 }
 0x1b0   : > { %v415_v36 = vrot.slane %v407_v25, %v2349_v24  ;;  %v422_v37 = vrot.slane %v408_v26, %v2349_v24 }
 0x1b1   : > { %v2345_v22 = vpop.permute.xlu1 %327  ;;  %v322_v23 = vpop.permute.xlu0 %321 }
 0x1b2   : > { %793 = vrot.lane.b32.xlu1 %v330_v16, %s2138_s9  ;;  %787 = vrot.lane.b32.xlu0 %v322_v23, %s2138_s9  ;;  %v339_v28 = vcombine.low %v311_v12, %v2345_v22  ;;  %v340_v29 = vcombine.high %v311_v12, %v2345_v22 }
 0x1b4   : > { %v347_v43 = vrot.slane %v339_v28, %v2349_v24  ;;  %v354_v44 = vrot.slane %v340_v29, %v2349_v24 }
 0x1b5   : > { %v336_v30 = vpop.permute.xlu1 %335  ;;  %v2353_v31 = vpop.permute.xlu0 %333 }
 0x1b6   : > { %v423_v32 = vcombine.low %v324_v17, %v336_v30  ;;  %v424_v33 = vcombine.high %v324_v17, %v336_v30  ;;  %v355_v34 = vcombine.low %v322_v23, %v2353_v31  ;;  %v356_v35 = vcombine.high %v322_v23, %v2353_v31  ;;  %797 = vrot.lane.b32.xlu1 %v336_v30, %s2138_s9 }
 0x1b7   : > { %791 = vrot.lane.b32.xlu0 %v2345_v22, %s2138_s9 }
 0x1b8   : > { %v431_v39 = vrot.slane %v423_v32, %v2349_v24  ;;  %v438_v40 = vrot.slane %v424_v33, %v2349_v24  ;;  %v363_v41 = vrot.slane %v355_v34, %v2349_v24  ;;  %v370_v42 = vrot.slane %v356_v35, %v2349_v24 }
 0x1ba   : > { %v439_v45 = vcombine.low %v415_v36, %v431_v39  ;;  %v440_v46 = vcombine.high %v415_v36, %v431_v39  ;;  %v455_v47 = vcombine.low %v422_v37, %v438_v40  ;;  %v456_v48 = vcombine.high %v422_v37, %v438_v40  ;;  %1254 = vrot.lane.b32.xlu1 %v324_v17, %s2139_s18 }
 0x1bb   : > { %v371_v49 = vcombine.low %v347_v43, %v363_v41  ;;  %v372_v50 = vcombine.high %v347_v43, %v363_v41  ;;  %v387_v51 = vcombine.low %v354_v44, %v370_v42  ;;  %v388_v52 = vcombine.high %v354_v44, %v370_v42  ;;  %795 = vrot.lane.b32.xlu0 %v2353_v31, %s2138_s9 }
 0x1bc   : > { %v447_v53 = vrot.slane %v439_v45, %v2360_v38  ;;  %v454_v54 = vrot.slane %v440_v46, %v2360_v38  ;;  %v463_v55 = vrot.slane %v455_v47, %v2360_v38  ;;  %v470_v56 = vrot.slane %v456_v48, %v2360_v38 }
 0x1bd   : > { %v379_v57 = vrot.slane %v371_v49, %v2360_v38  ;;  %v386_v58 = vrot.slane %v372_v50, %v2360_v38  ;;  %v395_v59 = vrot.slane %v387_v51, %v2360_v38  ;;  %v402_v60 = vrot.slane %v388_v52, %v2360_v38 }
 0x1be   : > { %v543_v61 = vcombine.low %v447_v53, %v454_v54  ;;  %v1842_v62 = vcombine.high %v447_v53, %v454_v54  ;;  %v577_v63 = vcombine.low %v463_v55, %v470_v56  ;;  %v1843_v0 = vcombine.high %v463_v55, %v470_v56  ;;  %1258 = vrot.lane.b32.xlu1 %v330_v16, %s2139_s18 }
 0x1bf   : > { %v475_v1 = vcombine.low %v379_v57, %v386_v58  ;;  %v1840_v2 = vcombine.high %v379_v57, %v386_v58  ;;  %v509_v3 = vcombine.low %v395_v59, %v402_v60  ;;  %v1841_v4 = vcombine.high %v395_v59, %v402_v60  ;;  %1252 = vrot.lane.b32.xlu0 %v322_v23, %s2139_s18 }
 0x1c0   : > { %v550_v5 = vrot.slane %v543_v61, %v2349_v24  ;;  %v558_v6 = vrot.slane %v1842_v62, %v2349_v24  ;;  %v584_v7 = vrot.slane %v577_v63, %v2349_v24  ;;  %v592_v8 = vrot.slane %v1843_v0, %v2349_v24 }
 0x1c1   : > { %v482_v9 = vrot.slane %v475_v1, %v2349_v24  ;;  %v490_v10 = vrot.slane %v1840_v2, %v2349_v24  ;;  %v516_v11 = vrot.slane %v509_v3, %v2349_v24  ;;  %v524_v12 = vrot.slane %v1841_v4, %v2349_v24 }
 0x1c2   : > { %1262 = vrot.lane.b32.xlu1 %v336_v30, %s2139_s18  ;;  %v559_v13 = vcombine.low %v550_v5, %v558_v6  ;;  %v560_v14 = vcombine.high %v550_v5, %v558_v6  ;;  %v593_v15 = vcombine.low %v584_v7, %v592_v8  ;;  %v594_v16 = vcombine.high %v584_v7, %v592_v8  ;;  %v786_v7 = vpop.permute.xlu1 %785  ;;  %v784_v8 = vpop.permute.xlu0 %783 }
 0x1c3   : > { %1256 = vrot.lane.b32.xlu0 %v2345_v22, %s2139_s18  ;;  %v491_v17 = vcombine.low %v482_v9, %v490_v10  ;;  %v492_v18 = vcombine.high %v482_v9, %v490_v10  ;;  %v525_v19 = vcombine.low %v516_v11, %v524_v12  ;;  %v526_v20 = vcombine.high %v516_v11, %v524_v12 }
 0x1c4   : > { %v567_v21 = vrot.slane %v559_v13, %v2360_v38  ;;  %v574_v23 = vrot.slane %v560_v14, %v2360_v38  ;;  %v601_v25 = vrot.slane %v593_v15, %v2360_v38  ;;  %v608_v26 = vrot.slane %v594_v16, %v2360_v38 }
 0x1c5   : > { %v499_v27 = vrot.slane %v491_v17, %v2360_v38  ;;  %v506_v28 = vrot.slane %v492_v18, %v2360_v38  ;;  %v533_v29 = vrot.slane %v525_v19, %v2360_v38  ;;  %v540_v22 = vrot.slane %v526_v20, %v2360_v38 }
 0x1c6   : > { %v679_v30 = vcombine.low %v567_v21, %v574_v23  ;;  %v1846_v32 = vcombine.high %v567_v21, %v574_v23  ;;  %v695_v33 = vcombine.low %v601_v25, %v608_v26  ;;  %v1847_v34 = vcombine.high %v601_v25, %v608_v26  ;;  %v2442_v9 = vpop.permute.xlu1 %1250  ;;  %v2444_v10 = vpop.permute.xlu0 %1248 }
 0x1c7   : > { %1260 = vrot.lane.b32.xlu0 %v2353_v31, %s2139_s18  ;;  %v611_v35 = vcombine.low %v499_v27, %v506_v28  ;;  %v1844_v36 = vcombine.high %v499_v27, %v506_v28  ;;  %v627_v37 = vcombine.low %v533_v29, %v540_v22  ;;  %v1845_v39 = vcombine.high %v533_v29, %v540_v22 }
 0x1c8   : > { %v686_v40 = vrot.slane %v679_v30, %v2349_v24  ;;  %v694_v41 = vrot.slane %v1846_v32, %v2349_v24  ;;  %v702_v42 = vrot.slane %v695_v33, %v2349_v24  ;;  %v710_v43 = vrot.slane %v1847_v34, %v2349_v24 }
 0x1c9   : > { %v618_v44 = vrot.slane %v611_v35, %v2349_v24  ;;  %v626_v45 = vrot.slane %v1844_v36, %v2349_v24  ;;  %v634_v46 = vrot.slane %v627_v37, %v2349_v24  ;;  %v642_v31 = vrot.slane %v1845_v39, %v2349_v24 }
 0x1ca   : > { %v711_v47 = vcombine.low %v686_v40, %v694_v41  ;;  %v727_v48 = vcombine.low %v702_v42, %v710_v43  ;;  %v712_v49 = vcombine.high %v686_v40, %v694_v41  ;;  %v728_v50 = vcombine.high %v702_v42, %v710_v43 }
 0x1cb   : > { %v643_v51 = vcombine.low %v618_v44, %v626_v45  ;;  %v659_v52 = vcombine.low %v634_v46, %v642_v31  ;;  %v644_v53 = vcombine.high %v618_v44, %v626_v45  ;;  %v660_v54 = vcombine.high %v634_v46, %v642_v31 }
 0x1cc   : > { %v2413_v55 = vrot.slane %v711_v47, %v2360_v38  ;;  %v2416_v56 = vrot.slane %v727_v48, %v2360_v38  ;;  %v726_v60 = vrot.slane %v712_v49, %v2360_v38  ;;  %v742_v61 = vrot.slane %v728_v50, %v2360_v38 }
 0x1cd   : > { %v2419_v57 = vrot.slane %v643_v51, %v2360_v38  ;;  %v2422_v58 = vrot.slane %v659_v52, %v2360_v38  ;;  %v658_v0 = vrot.slane %v644_v53, %v2360_v38  ;;  %v674_v1 = vrot.slane %v660_v54, %v2360_v38 }
 0x1ce   : > { %v744_v59 = vcombine.high %v2413_v55, %v2416_v56  ;;  %v743_v62 = vcombine.low %v2413_v55, %v2416_v56  ;;  %v745_v3 = vcombine.low %v726_v60, %v742_v61  ;;  %v746_v5 = vcombine.high %v726_v60, %v742_v61 }
 0x1cf   : > { %v676_v63 = vcombine.high %v2419_v57, %v2422_v58  ;;  %v675_v2 = vcombine.low %v2419_v57, %v2422_v58  ;;  %v677_v4 = vcombine.low %v658_v0, %v674_v1  ;;  %v678_v6 = vcombine.high %v658_v0, %v674_v1 }
 0x1d0   : > { %751 = vrot.lane.b32.xlu1 %v744_v59, %s2142_s19 }
 0x1d1   : > { %749 = vrot.lane.b32.xlu0 %v676_v63, %s2142_s19 }
 0x1d4   : > { %759 = vrot.lane.b32.xlu1 %v745_v3, %s2143_s25 }
 0x1d5   : > { %757 = vrot.lane.b32.xlu0 %v677_v4, %s2143_s25 }
 0x1d8   : > { %767 = vrot.lane.b32.xlu1 %v746_v5, %s2144_s26 }
 0x1d9   : > { %765 = vrot.lane.b32.xlu0 %v678_v6, %s2144_s26 }
 0x220   : > { %v790_v11 = vpop.permute.xlu1 %789 }
 0x224   : > { %v794_v12 = vpop.permute.xlu1 %793  ;;  %v788_v13 = vpop.permute.xlu0 %787 }
 0x225   : > { %v875_v14 = vcombine.low %v786_v7, %v794_v12  ;;  %v876_v15 = vcombine.high %v786_v7, %v794_v12 }
 0x227   : > { %v883_v20 = vrot.slane %v875_v14, %v2349_v24  ;;  %v890_v21 = vrot.slane %v876_v15, %v2349_v24 }
 0x228   : > { %v798_v16 = vpop.permute.xlu1 %797 }
 0x229   : > { %v891_v17 = vcombine.low %v790_v11, %v798_v16  ;;  %v892_v18 = vcombine.high %v790_v11, %v798_v16  ;;  %v792_v19 = vpop.permute.xlu0 %791 }
 0x22a   : > { %v807_v26 = vcombine.low %v784_v8, %v792_v19  ;;  %v808_v27 = vcombine.high %v784_v8, %v792_v19 }
 0x22b   : > { %v899_v23 = vrot.slane %v891_v17, %v2349_v24  ;;  %v906_v25 = vrot.slane %v892_v18, %v2349_v24 }
 0x22c   : > { %v1255_v28 = vpop.permute.xlu1 %1254  ;;  %v815_v41 = vrot.slane %v807_v26, %v2349_v24  ;;  %v822_v42 = vrot.slane %v808_v27, %v2349_v24 }
 0x22d   : > { %v907_v29 = vcombine.low %v883_v20, %v899_v23  ;;  %v908_v22 = vcombine.high %v883_v20, %v899_v23  ;;  %v923_v30 = vcombine.low %v890_v21, %v906_v25  ;;  %v924_v32 = vcombine.high %v890_v21, %v906_v25  ;;  %v796_v33 = vpop.permute.xlu0 %795 }
 0x22e   : > { %v823_v34 = vcombine.low %v788_v13, %v796_v33  ;;  %v824_v35 = vcombine.high %v788_v13, %v796_v33 }
 0x22f   : > { %v915_v36 = vrot.slane %v907_v29, %v2360_v38  ;;  %v922_v37 = vrot.slane %v908_v22, %v2360_v38  ;;  %v931_v39 = vrot.slane %v923_v30, %v2360_v38  ;;  %v938_v40 = vrot.slane %v924_v32, %v2360_v38 }
 0x230   : > { %v831_v43 = vrot.slane %v823_v34, %v2349_v24  ;;  %v838_v44 = vrot.slane %v824_v35, %v2349_v24  ;;  %v1259_v45 = vpop.permute.xlu1 %1258 }
 0x231   : > { %v1011_v46 = vcombine.low %v915_v36, %v922_v37  ;;  %v1850_v31 = vcombine.high %v915_v36, %v922_v37  ;;  %v1045_v47 = vcombine.low %v931_v39, %v938_v40  ;;  %v1851_v48 = vcombine.high %v931_v39, %v938_v40  ;;  %v1253_v49 = vpop.permute.xlu0 %1252 }
 0x232   : > { %v839_v50 = vcombine.low %v815_v41, %v831_v43  ;;  %v840_v51 = vcombine.high %v815_v41, %v831_v43  ;;  %v855_v52 = vcombine.low %v822_v42, %v838_v44  ;;  %v856_v53 = vcombine.high %v822_v42, %v838_v44 }
 0x233   : > { %v2459_v54 = vrot.slane %v1011_v46, %v2349_v24  ;;  %v2462_v59 = vrot.slane %v1850_v31, %v2349_v24  ;;  %v2465_v60 = vrot.slane %v1045_v47, %v2349_v24  ;;  %v2468_v61 = vrot.slane %v1851_v48, %v2349_v24 }
 0x234   : > { %v847_v63 = vrot.slane %v839_v50, %v2360_v38  ;;  %v854_v0 = vrot.slane %v840_v51, %v2360_v38  ;;  %v863_v1 = vrot.slane %v855_v52, %v2360_v38  ;;  %v870_v3 = vrot.slane %v856_v53, %v2360_v38  ;;  %v1263_v4 = vpop.permute.xlu1 %1262 }
 0x235   : > { %v1027_v5 = vcombine.low %v2459_v54, %v2462_v59  ;;  %v1028_v6 = vcombine.high %v2459_v54, %v2462_v59  ;;  %v1061_v7 = vcombine.low %v2465_v60, %v2468_v61  ;;  %v1257_v8 = vpop.permute.xlu0 %1256  ;;  %v1340_v15 = vcombine.low %v2442_v9, %v1259_v45 }
 0x236   : > { %v943_v11 = vcombine.low %v847_v63, %v854_v0  ;;  %v1848_v12 = vcombine.high %v847_v63, %v854_v0  ;;  %v977_v13 = vcombine.low %v863_v1, %v870_v3  ;;  %v1849_v14 = vcombine.high %v863_v1, %v870_v3 }
 0x237   : > { %v1341_v16 = vcombine.high %v2442_v9, %v1259_v45  ;;  %v1356_v17 = vcombine.low %v1255_v28, %v1263_v4  ;;  %v1357_v18 = vcombine.high %v1255_v28, %v1263_v4  ;;  %v1348_v25 = vrot.slane %v1340_v15, %v2349_v24 }
 0x238   : > { %v2483_v19 = vrot.slane %v943_v11, %v2349_v24  ;;  %v2486_v20 = vrot.slane %v1848_v12, %v2349_v24  ;;  %v2489_v21 = vrot.slane %v977_v13, %v2349_v24  ;;  %v2492_v23 = vrot.slane %v1849_v14, %v2349_v24 }
 0x239   : > { %v1355_v26 = vrot.slane %v1341_v16, %v2349_v24  ;;  %v1364_v9 = vrot.slane %v1356_v17, %v2349_v24  ;;  %v1371_v27 = vrot.slane %v1357_v18, %v2349_v24  ;;  %v1261_v28 = vpop.permute.xlu0 %1260  ;;  %v1062_v29 = vcombine.high %v2465_v60, %v2468_v61 }
 0x23a   : > { %v959_v22 = vcombine.low %v2483_v19, %v2486_v20  ;;  %v960_v30 = vcombine.high %v2483_v19, %v2486_v20  ;;  %v993_v32 = vcombine.low %v2489_v21, %v2492_v23  ;;  %v1272_v37 = vcombine.low %v2444_v10, %v1257_v8 }
 0x23b   : > { %v1372_v33 = vcombine.low %v1348_v25, %v1364_v9  ;;  %v1373_v34 = vcombine.high %v1348_v25, %v1364_v9  ;;  %v1388_v35 = vcombine.low %v1355_v26, %v1371_v27  ;;  %v1389_v36 = vcombine.high %v1355_v26, %v1371_v27 }
 0x23c   : > { %v1273_v39 = vcombine.high %v2444_v10, %v1257_v8  ;;  %v1288_v40 = vcombine.low %v1253_v49, %v1261_v28  ;;  %v1289_v41 = vcombine.high %v1253_v49, %v1261_v28  ;;  %v1280_v46 = vrot.slane %v1272_v37, %v2349_v24 }
 0x23d   : > { %v1380_v42 = vrot.slane %v1372_v33, %v2360_v38  ;;  %v1387_v43 = vrot.slane %v1373_v34, %v2360_v38  ;;  %v1396_v44 = vrot.slane %v1388_v35, %v2360_v38  ;;  %v1403_v45 = vrot.slane %v1389_v36, %v2360_v38 }
 0x23e   : > { %v1287_v31 = vrot.slane %v1273_v39, %v2349_v24  ;;  %v1296_v47 = vrot.slane %v1288_v40, %v2349_v24  ;;  %v1303_v48 = vrot.slane %v1289_v41, %v2349_v24  ;;  %v994_v16 = vcombine.high %v2489_v21, %v2492_v23 }
 0x23f   : > { %v1476_v50 = vcombine.low %v1380_v42, %v1387_v43  ;;  %v1860_v10 = vcombine.high %v1380_v42, %v1387_v43  ;;  %v1510_v51 = vcombine.low %v1396_v44, %v1403_v45  ;;  %v1861_v49 = vcombine.high %v1396_v44, %v1403_v45 }
 0x240   : > { %v1304_v52 = vcombine.low %v1280_v46, %v1296_v47  ;;  %v1305_v53 = vcombine.high %v1280_v46, %v1296_v47  ;;  %v1320_v63 = vcombine.low %v1287_v31, %v1303_v48  ;;  %v1321_v0 = vcombine.high %v1287_v31, %v1303_v48 }
 0x241   : > { %v2517_v1 = vrot.slane %v1476_v50, %v2349_v24  ;;  %v2520_v3 = vrot.slane %v1860_v10, %v2349_v24  ;;  %v2523_v4 = vrot.slane %v1510_v51, %v2349_v24  ;;  %v2526_v8 = vrot.slane %v1861_v49, %v2349_v24 }
 0x242   : > { %v1312_v11 = vrot.slane %v1304_v52, %v2360_v38  ;;  %v1319_v12 = vrot.slane %v1305_v53, %v2360_v38  ;;  %v1328_v13 = vrot.slane %v1320_v63, %v2360_v38  ;;  %v1335_v14 = vrot.slane %v1321_v0, %v2360_v38  ;;  %v752_v15 = vpop.permute.xlu1 %751 }
 0x243   : > { %v1492_v17 = vcombine.low %v2517_v1, %v2520_v3  ;;  %v1493_v18 = vcombine.high %v2517_v1, %v2520_v3  ;;  %v1526_v25 = vcombine.low %v2523_v4, %v2526_v8  ;;  %v750_v26 = vpop.permute.xlu0 %749  ;;  %v1527_v34 = vcombine.high %v2523_v4, %v2526_v8 }
 0x244   : > { %v1408_v9 = vcombine.low %v1312_v11, %v1319_v12  ;;  %v1858_v27 = vcombine.high %v1312_v11, %v1319_v12  ;;  %v1442_v28 = vcombine.low %v1328_v13, %v1335_v14  ;;  %v1859_v33 = vcombine.high %v1328_v13, %v1335_v14 }
 0x245   : > { %v773_v35 = vsel %vm771_vm1, %v743_v62, %v752_v15  ;;  %v1035_v36 = vrot.slane %v1027_v5, %v2360_v38  ;;  %v1042_v37 = vrot.slane %v1028_v6, %v2360_v38  ;;  %v1069_v54 = vrot.slane %v1061_v7, %v2360_v38 }
 0x246   : > { %v2555_v39 = vrot.slane %v1408_v9, %v2349_v24  ;;  %v2558_v40 = vrot.slane %v1858_v27, %v2349_v24  ;;  %v2561_v55 = vrot.slane %v1442_v28, %v2349_v24  ;;  %v2564_v56 = vrot.slane %v1859_v33, %v2349_v24  ;;  %v760_v62 = vpop.permute.xlu1 %759 }
 0x247   : > { %v1076_v59 = vrot.slane %v1062_v29, %v2360_v38  ;;  %v1147_v5 = vcombine.low %v1035_v36, %v1042_v37  ;;  %v1854_v6 = vcombine.high %v1035_v36, %v1042_v37  ;;  %v758_v41 = vpop.permute.xlu0 %757  ;;  %v772_v60 = vsel %vm771_vm1, %v675_v2, %v750_v26 }
 0x248   : > { %v1424_v42 = vcombine.low %v2555_v39, %v2558_v40  ;;  %v1425_v43 = vcombine.high %v2555_v39, %v2558_v40  ;;  %v1458_v44 = vcombine.low %v2561_v55, %v2564_v56  ;;  %v776_v46 = vsel %vm774_vm2, %v773_v35, %v760_v62 }
 0x249   : > { %v2583_v61 = vrot.slane %v1147_v5, %v2349_v24  ;;  %v1162_v7 = vrot.slane %v1854_v6, %v2349_v24  ;;  %v1163_v29 = vcombine.low %v1069_v54, %v1076_v59  ;;  %v1855_v45 = vcombine.high %v1069_v54, %v1076_v59 }
 0x24a   : > { %v775_v31 = vsel %vm774_vm2, %v772_v60, %v758_v41  ;;  %v967_v47 = vrot.slane %v959_v22, %v2360_v38  ;;  %v974_v57 = vrot.slane %v960_v30, %v2360_v38  ;;  %v768_v58 = vpop.permute.xlu1 %767  ;;  %v1001_v10 = vrot.slane %v993_v32, %v2360_v38 }
 0x24b   : > { %v1170_v2 = vrot.slane %v1163_v29, %v2349_v24  ;;  %v1178_v48 = vrot.slane %v1855_v45, %v2349_v24  ;;  %v1179_v50 = vcombine.low %v2583_v61, %v1162_v7  ;;  %v766_v51 = vpop.permute.xlu0 %765  ;;  %v1008_v22 = vrot.slane %v994_v16, %v2360_v38 }
 0x24c   : > { %v1079_v49 = vcombine.low %v967_v47, %v974_v57  ;;  %v1852_v52 = vcombine.high %v967_v47, %v974_v57  ;;  %v779_v19 = vsel %vm777_vm3, %v776_v46, %v768_v58  ;;  %v778_v21 = vsel %vm777_vm3, %v775_v31, %v766_v51 }
 0x24d   : > { %v2606_v20 = vrot.slane %v1179_v50, %v2360_v38  ;;  %v1195_v30 = vcombine.low %v1170_v2, %v1178_v48  ;;  %782 = vst.msk [vmem:[%s2608_s4 + $0x8] sm:$0xff] %vm780_vm4, %v779_v19  ;;  %v1500_v23 = vrot.slane %v1492_v17, %v2360_v38  ;;  %v1095_v63 = vcombine.low %v1001_v10, %v1008_v22 }
 0x24e   : > { %v2615_v32 = vrot.slane %v1079_v49, %v2349_v24  ;;  %v1094_v53 = vrot.slane %v1852_v52, %v2349_v24  ;;  %v1853_v0 = vcombine.high %v1001_v10, %v1008_v22  ;;  %781 = vst.msk [vmem:[%s2608_s4] sm:$0xff] %vm780_vm4, %v778_v21  ;;  %v1507_v3 = vrot.slane %v1493_v18, %v2360_v38 }
 0x24f   : > { %v2621_v1 = vrot.slane %v1195_v30, %v2360_v38  ;;  %v1534_v4 = vrot.slane %v1526_v25, %v2360_v38  ;;  %v1541_v8 = vrot.slane %v1527_v34, %v2360_v38  ;;  %v1459_v11 = vcombine.high %v2561_v55, %v2564_v56 }
 0x250   : > { %v1102_v12 = vrot.slane %v1095_v63, %v2349_v24  ;;  %v1110_v13 = vrot.slane %v1853_v0, %v2349_v24  ;;  %v1111_v14 = vcombine.low %v2615_v32, %v1094_v53  ;;  %v1612_v16 = vcombine.low %v1500_v23, %v1507_v3 }
 0x251   : > { %v1212_v15 = vcombine.high %v2606_v20, %v2621_v1  ;;  %v1864_v17 = vcombine.high %v1500_v23, %v1507_v3  ;;  %v1628_v26 = vcombine.low %v1534_v4, %v1541_v8  ;;  %v1865_v9 = vcombine.high %v1534_v4, %v1541_v8 }
 0x252   : > { %v2634_v18 = vrot.slane %v1111_v14, %v2360_v38  ;;  %v1127_v25 = vcombine.low %v1102_v12, %v1110_v13  ;;  %v1180_v27 = vcombine.high %v2583_v61, %v1162_v7  ;;  %v1619_v28 = vrot.slane %v1612_v16, %v2349_v24 }
 0x253   : > { %1219 = vrot.lane.b32.xlu1 %v1212_v15, %s2142_s19  ;;  %v1627_v33 = vrot.slane %v1864_v17, %v2349_v24  ;;  %v1635_v34 = vrot.slane %v1628_v26, %v2349_v24  ;;  %v1196_v35 = vcombine.high %v1170_v2, %v1178_v48  ;;  %v1643_v37 = vrot.slane %v1865_v9, %v2349_v24 }
 0x254   : > { %v2642_v36 = vrot.slane %v1127_v25, %v2360_v38  ;;  %v1432_v39 = vrot.slane %v1424_v42, %v2360_v38  ;;  %v1439_v40 = vrot.slane %v1425_v43, %v2360_v38  ;;  %v1466_v56 = vrot.slane %v1458_v44, %v2360_v38 }
 0x255   : > { %v1644_v55 = vcombine.low %v1619_v28, %v1627_v33  ;;  %v1473_v62 = vrot.slane %v1459_v11, %v2360_v38  ;;  %v1660_v59 = vcombine.low %v1635_v34, %v1643_v37  ;;  %v1194_v60 = vrot.slane %v1180_v27, %v2360_v38 }
 0x256   : > { %v1144_v54 = vcombine.high %v2634_v18, %v2642_v36  ;;  %v1544_v5 = vcombine.low %v1432_v39, %v1439_v40  ;;  %v1862_v6 = vcombine.high %v1432_v39, %v1439_v40  ;;  %v1210_v44 = vrot.slane %v1196_v35, %v2360_v38 }
 0x257   : > { %v2652_v41 = vrot.slane %v1644_v55, %v2360_v38  ;;  %v1560_v61 = vcombine.low %v1466_v56, %v1473_v62  ;;  %v1863_v42 = vcombine.high %v1466_v56, %v1473_v62  ;;  %v1668_v43 = vrot.slane %v1660_v59, %v2360_v38 }
 0x258   : > { %1217 = vrot.lane.b32.xlu0 %v1144_v54, %s2142_s19  ;;  %v1551_v7 = vrot.slane %v1544_v5, %v2349_v24  ;;  %v1559_v29 = vrot.slane %v1862_v6, %v2349_v24  ;;  %v1645_v31 = vcombine.high %v1619_v28, %v1627_v33  ;;  %v1661_v47 = vcombine.high %v1635_v34, %v1643_v37 }
 0x259   : > { %v1567_v45 = vrot.slane %v1560_v61, %v2349_v24  ;;  %v1575_v46 = vrot.slane %v1863_v42, %v2349_v24  ;;  %v1677_v57 = vcombine.high %v2652_v41, %v1668_v43  ;;  %v1112_v2 = vcombine.high %v2615_v32, %v1094_v53 }
 0x25a   : > { %v1576_v58 = vcombine.low %v1551_v7, %v1559_v29  ;;  %v1128_v48 = vcombine.high %v1102_v12, %v1110_v13  ;;  %v1213_v10 = vcombine.low %v1194_v60, %v1210_v44  ;;  %v1659_v49 = vrot.slane %v1645_v31, %v2360_v38 }
 0x25b   : > { %v1592_v50 = vcombine.low %v1567_v45, %v1575_v46  ;;  %1684 = vrot.lane.b32.xlu1 %v1677_v57, %s2142_s19  ;;  %v1675_v24 = vrot.slane %v1661_v47, %v2360_v38  ;;  %v1211_v52 = vcombine.low %v2606_v20, %v2621_v1  ;;  %v1126_v19 = vrot.slane %v1112_v2, %v2360_v38 }
 0x25c   : > { %v1584_v51 = vrot.slane %v1576_v58, %v2360_v38  ;;  %v1142_v30 = vrot.slane %v1128_v48, %v2360_v38  ;;  %v1577_v21 = vcombine.high %v1551_v7, %v1559_v29  ;;  %v1593_v23 = vcombine.high %v1567_v45, %v1575_v46 }
 0x25d   : > { %v1600_v22 = vrot.slane %v1592_v50, %v2360_v38  ;;  %v1143_v53 = vcombine.low %v2634_v18, %v2642_v36  ;;  %v1676_v63 = vcombine.low %v2652_v41, %v1668_v43  ;;  %v1678_v3 = vcombine.low %v1659_v49, %v1675_v24 }
 0x25e   : > { %v1145_v4 = vcombine.low %v1126_v19, %v1142_v30  ;;  %v1591_v20 = vrot.slane %v1577_v21, %v2360_v38  ;;  %v1607_v1 = vrot.slane %v1593_v23, %v2360_v38  ;;  %v1214_v8 = vcombine.high %v1194_v60, %v1210_v44 }
 0x25f   : > { %v1609_v32 = vcombine.high %v1584_v51, %v1600_v22  ;;  %v1608_v0 = vcombine.low %v1584_v51, %v1600_v22  ;;  %1227 = vrot.lane.b32.xlu1 %v1213_v10, %s2143_s25  ;;  %v1679_v12 = vcombine.high %v1659_v49, %v1675_v24  ;;  %v1146_v13 = vcombine.high %v1126_v19, %v1142_v30 }
 0x260   : > { %v1610_v11 = vcombine.low %v1591_v20, %v1607_v1  ;;  %v1611_v14 = vcombine.high %v1591_v20, %v1607_v1 }
 0x261   : > { %1682 = vrot.lane.b32.xlu0 %v1609_v32, %s2142_s19 }
 0x263   : > { %1692 = vrot.lane.b32.xlu1 %v1678_v3, %s2143_s25 }
 0x265   : > { %1225 = vrot.lane.b32.xlu0 %v1145_v4, %s2143_s25 }
 0x267   : > { %1235 = vrot.lane.b32.xlu1 %v1214_v8, %s2144_s26 }
 0x269   : > { %1690 = vrot.lane.b32.xlu0 %v1610_v11, %s2143_s25 }
 0x26b   : > { %1700 = vrot.lane.b32.xlu1 %v1679_v12, %s2144_s26 }
 0x26d   : > { %1233 = vrot.lane.b32.xlu0 %v1146_v13, %s2144_s26 }
 0x271   : > { %1698 = vrot.lane.b32.xlu0 %v1611_v14, %s2144_s26 }
 0x2c5   : > { %v1220_v38 = vpop.permute.xlu1 %1219 }
 0x2c6   : > { %v1240_v9 = vsel %vm771_vm1, %v1211_v52, %v1220_v38 }
 0x2ca   : > { %v1218_v16 = vpop.permute.xlu0 %1217 }
 0x2cb   : > { %v1239_v36 = vsel %vm771_vm1, %v1143_v53, %v1218_v16 }
 0x2cd   : > { %v1685_v15 = vpop.permute.xlu1 %1684 }
 0x2ce   : > { %v1705_v35 = vsel %vm771_vm1, %v1676_v63, %v1685_v15 }
 0x2d1   : > { %v1228_v17 = vpop.permute.xlu1 %1227 }
 0x2d2   : > { %v1242_v27 = vsel %vm774_vm2, %v1240_v9, %v1228_v17 }
 0x2d3   : > { %v1683_v26 = vpop.permute.xlu0 %1682 }
 0x2d4   : > { %v1704_v54 = vsel %vm771_vm1, %v1608_v0, %v1683_v26 }
 0x2d5   : > { %v1693_v18 = vpop.permute.xlu1 %1692 }
 0x2d6   : > { %v1707_v37 = vsel %vm774_vm2, %v1705_v35, %v1693_v18 }
 0x2d7   : > { %v1226_v25 = vpop.permute.xlu0 %1225 }
 0x2d8   : > { %v1241_v40 = vsel %vm774_vm2, %v1239_v36, %v1226_v25 }
 0x2d9   : > { %v1236_v28 = vpop.permute.xlu1 %1235 }
 0x2da   : > { %v1244_v33 = vsel %vm777_vm3, %v1242_v27, %v1236_v28 }
 0x2db   : > { %v1691_v34 = vpop.permute.xlu0 %1690  ;;  %1857 = vst.msk [vmem:[%s2608_s4 + $0x18] sm:$0xff] %vm780_vm4, %v1244_v33 }
 0x2dc   : > { %v1706_v59 = vsel %vm774_vm2, %v1704_v54, %v1691_v34 }
 0x2dd   : > { %v1701_v39 = vpop.permute.xlu1 %1700 }
 0x2de   : > { %v1709_v55 = vsel %vm777_vm3, %v1707_v37, %v1701_v39 }
 0x2df   : > { %v1234_v56 = vpop.permute.xlu0 %1233  ;;  %1867 = vst.msk [vmem:[%s2608_s4 + $0x28] sm:$0xff] %vm780_vm4, %v1709_v55 }
 0x2e0   : > { %v1243_v62 = vsel %vm777_vm3, %v1241_v40, %v1234_v56 }
 0x2e1   : > { %1856 = vst.msk [vmem:[%s2608_s4 + $0x10] sm:$0xff] %vm780_vm4, %v1243_v62 }
 0x2e3   : > { %v1699_v5 = vpop.permute.xlu0 %1698 }
 0x2e4   : > { %v1708_v6 = vsel %vm777_vm3, %v1706_v59, %v1699_v5 }
 0x2e5   : > { %1866 = vst.msk [vmem:[%s2608_s4 + $0x20] sm:$0xff] %vm780_vm4, %v1708_v6 }
 0x2e6   : > { %2056 = shalt.err (!%p2053_p5)
}
 0x2e7   : > { %s2057_s9 = scalar_lea.hbm %s2711_s15, 768  ;;  %s2061_s26 = scalar_lea.hbm %s2767_s3, 1536 }
 0x2e8   : > { %p2058_p9 = scmp.ne.s32.totalorder %s2711_s15, %s2057_s9  ;;  %p2062_p3 = scmp.lt.u32.totalorder %s2711_s15, %s2767_s3 }
 0x2e9   : > { %p2063_p7 = scmp.lt.u32.totalorder %s2061_s26, %s2057_s9  ;;  %p2065_p13 = scmp.lt.u32.totalorder %s2057_s9, %s2711_s15 }
 0x2ea   : > { %p2059_p1 = pnand %p2058_p9, %p2266_p10 }
 0x2eb   : > { %p2064_p4 = por %p2063_p7, %p2062_p3 }
 0x2ec   : > { %p2060_p2 = pneg %p2059_p1 }
 0x2ed   : > { %p2066_p6 = por %p2065_p13, %p2064_p4 }
 0x2ef   : > { %p2067_p8 = pnand %p2066_p6, %p2060_p2 }
 0x2f1   : > { %2070 = shalt.err (!%p2067_p8)
}
 0x2f2   : > { %s2146_s29 = smov 128  }
 0x2f3   : > { %1905 = dma.vmem_to_hbm [thread:$0]  (%p2266_p10), %s2704_s6, 768, %s2711_s15, %s1714_s22, %s2146_s29, %s2146_s29, %s2143_s25  }
 0x2f4 PF: > { %s1744_s7 = sand.u32 1, %s2109_s12   ;;  %p2785_p12 = scmp.ne.s32.totalorder %s2775_s23, 0 }
 0x2f5   : > { %p2786_p11 = scmp.ge.s32.totalorder %s2129_s17, 2  ;;  %s1745_s8 = scalar_lea.sflag [#allocation4], %s1744_s7 }
 0x2f7   : > { %p1916_p0 = pnand %p2786_p11, %p2785_p12 }
 0x2f9   : > { %2104 = dma.done.wait (!%p1916_p0), %s1745_s8, 768  }
 0x2fa   : > { %2106 = vsyncadd (!%p1916_p0), %s1745_s8, 4294966528  ;;  %s20_s17 = sadd.s32 1, %s2129_s17   ;;  %s2787_s12 = smov %s2113_s13 }
 0x2fb   : > { %p17_p5 = scmp.ge.s32.totalorder %s20_s17, 4   ;;  %s2788_s13 = smov %s2117_s14 }
 0x2fc   : > { %s2789_s14 = smov %s2275_s5  ;;  %s2790_s15 = smov %s2125_s16 }
 0x2fd   : > { %s2791_s16 = smov %s2793_s28  ;;  %19 = sbr.rel (!%p17_p5) target bundleno = 7 (0x7), region = 83 }
 0x304   :  { %1750 = vsyncpa [#allocation3], 1 }
 0x305   :  { %1752 = vsyncpa [#allocation3 + $0x1], 1 }
 0x306   :  { %1753 = vsyncpa [#allocation6], 1 }
 0x307   :  { %1754 = vsyncpa [#allocation4], 1 }
 0x308   :  { %1756 = vsyncpa [#allocation4 + $0x1], 1 }

</bundles_post_ra>
